<compile_context>
chip_gen: v7x
topology: tpu7x:2x2x1
jax: 0.10.0
libtpu: 0.0.40
codegen_flags: <defaults>
</compile_context>

<pallas_src>
import functools

import jax
import jax.numpy as jnp
from jax.experimental import pallas as pl
from jax.experimental.pallas import tpu as pltpu


def _round_up(x, m):
    return (x + m - 1) // m * m


# ----------------------------------------------------------------------------
# Kernel 1: single-step update.  Touches only the one bins row containing the
# target bin (row selected by the scalar-prefetched bin index in the index_map).
# ----------------------------------------------------------------------------
def _step_kernel(bin_idx_ref, bins_row_ref, spikes_ref, out_row_ref):
    # bin_idx_ref : SMEM (1,) int32   (consumed by the index_maps)
    # bins_row_ref: VMEM (1, B, N)    current value of the touched bins row
    # spikes_ref  : VMEM (B, N)       spikes for this timestep
    # out_row_ref : VMEM (1, B, N)    updated bins row (aliased HBM buffer)
    del bin_idx_ref
    out_row_ref[...] = (bins_row_ref[...]
                        + spikes_ref[...][None, :, :].astype(out_row_ref.dtype))


@functools.partial(jax.jit, donate_argnums=(0,))
def time_bin_step(bins, spikes, bin_idx):
    """bins[bin_idx] += spikes, touching only that row.  bins: (T, B, N)."""
    T, B, N = bins.shape
    itemsize = jnp.dtype(bins.dtype).itemsize
    return pl.pallas_call(
        _step_kernel,
        out_shape=jax.ShapeDtypeStruct((T, B, N), bins.dtype),
        grid_spec=pltpu.PrefetchScalarGridSpec(
            num_scalar_prefetch=1,
            grid=(1,),
            in_specs=[
                # Only the touched bins row is DMA'd.
                pl.BlockSpec((1, B, N), lambda i, idx: (idx[0], 0, 0)),
                pl.BlockSpec((B, N), lambda i, idx: (0, 0)),
            ],
            out_specs=pl.BlockSpec((1, B, N), lambda i, idx: (idx[0], 0, 0)),
        ),
        # bins (call-arg 1, after the scalar-prefetch arg) aliases the output:
        # the untouched T-1 rows are never re-read or re-written.
        input_output_aliases={1: 0},
        cost_estimate=pl.CostEstimate(
            flops=int(B * N),
            transcendentals=0,
            bytes_accessed=int(3 * B * N * itemsize)),
    )(bin_idx, bins, spikes)


# ----------------------------------------------------------------------------
# Kernel 2: chunked update.  Grid = (batch blocks [parallel], time blocks
# [arbitrary]).  bins slab lives in one VMEM scratch: DMA'd in at the first
# time block, DMA'd out at the last.  Each grid step folds s_blk timesteps.
# ----------------------------------------------------------------------------
def _chunk_kernel(s_blk, b_blk,
                  bin_idx_ref,    # SMEM (S_pad,) int32 (scalar prefetch)
                  bins_hbm_ref,   # ANY  (T, B_pad, N_pad) previous state
                  spikes_ref,     # VMEM (s_blk, b_blk, N_pad)
                  out_hbm_ref,    # ANY  (T, B_pad, N_pad) aliased to bins_hbm
                  bins_vmem,      # VMEM (T, b_blk, N_pad) resident accumulator
                  copy_sem):      # DMA semaphore
    b = pl.program_id(0)
    s = pl.program_id(1)
    n_s = pl.num_programs(1)
    b0 = pl.multiple_of(b * b_blk, b_blk)

    # Fetch this batch block's bins slab into VMEM once (DMA engine, not VPU).
    @pl.when(s == 0)
    def _():
        cp = pltpu.make_async_copy(
            bins_hbm_ref.at[:, pl.ds(b0, b_blk), :], bins_vmem, copy_sem)
        cp.start()
        cp.wait()

    base = s * s_blk

    def _scatter_one(j, t):
        row = bins_vmem[pl.ds(t, 1), :, :]
        bins_vmem[pl.ds(t, 1), :, :] = (
            row + spikes_ref[pl.ds(j, 1), :, :].astype(row.dtype))

    if s_blk == 1:
        _scatter_one(0, bin_idx_ref[base])
    else:
        t0 = bin_idx_ref[base]
        same = bin_idx_ref[base + 1] == t0
        for j in range(2, s_blk):
            same = jnp.logical_and(same, bin_idx_ref[base + j] == t0)

        # Fast path: the whole block lands in a single bin (always true when
        # time is monotone and the block is aligned to a bin boundary, i.e.
        # s_blk == bin_size): one vectorized reduction + one dynamic-slice add.
        @pl.when(same)
        def _():
            acc = jnp.sum(spikes_ref[...].astype(bins_vmem.dtype), axis=0,
                          keepdims=True)
            row = bins_vmem[pl.ds(t0, 1), :, :]
            bins_vmem[pl.ds(t0, 1), :, :] = row + acc

        # Slow path: per-step scatter (statically unrolled; spike slices are
        # static, only the bins row index is dynamic).
        @pl.when(jnp.logical_not(same))
        def _():
            for j in range(s_blk):
                _scatter_one(j, bin_idx_ref[base + j])

    # Write the slab back to HBM once, after the last time block.
    @pl.when(s == n_s - 1)
    def _():
        cp = pltpu.make_async_copy(
            bins_vmem, out_hbm_ref.at[:, pl.ds(b0, b_blk), :], copy_sem)
        cp.start()
        cp.wait()


@functools.partial(jax.jit, static_argnames=("s_blk", "b_blk"),
                   donate_argnums=(0,))
def time_bin_chunk(bins, spikes_chunk, bin_idx, *, s_blk, b_blk):
    """Accumulate S timesteps in one kernel.

    bins:         (T, B_pad, N_pad) float accumulator (donated).
    spikes_chunk: (S_pad, B_pad, N_pad), S_pad a multiple of s_blk.
    bin_idx:      (S_pad,) int32, target bin per timestep.
    """
    T, B_pad, N_pad = bins.shape
    S_pad = spikes_chunk.shape[0]
    assert S_pad % s_blk == 0 and B_pad % b_blk == 0
    n_b = B_pad // b_blk
    n_s = S_pad // s_blk
    acc_isize = jnp.dtype(bins.dtype).itemsize
    spk_isize = jnp.dtype(spikes_chunk.dtype).itemsize

    # Explicit VMEM budget: one bins slab + double-buffered spike blocks.
    vmem_needed = (T * b_blk * N_pad * acc_isize
                   + 2 * s_blk * b_blk * N_pad * spk_isize)
    vmem_limit = int(min(max(2 * vmem_needed + (4 << 20), 32 << 20), 48 << 20))

    kernel = functools.partial(_chunk_kernel, s_blk, b_blk)
    return pl.pallas_call(
        kernel,
        out_shape=jax.ShapeDtypeStruct((T, B_pad, N_pad), bins.dtype),
        grid_spec=pltpu.PrefetchScalarGridSpec(
            num_scalar_prefetch=1,
            grid=(n_b, n_s),
            in_specs=[
                pl.BlockSpec(memory_space=pl.ANY),         # bins stay in HBM
                pl.BlockSpec((s_blk, b_blk, N_pad),
                             lambda b, s, idx: (s, b, 0)),  # streamed spikes
            ],
            out_specs=pl.BlockSpec(memory_space=pl.ANY),
            scratch_shapes=[
                pltpu.VMEM((T, b_blk, N_pad), bins.dtype),  # single resident copy
                pltpu.SemaphoreType.DMA,
            ]),
        # bins (call-arg 1, after the scalar-prefetch arg) alias the output:
        # each batch slab is rewritten exactly once via DMA.
        input_output_aliases={1: 0},
        compiler_params=pltpu.CompilerParams(
            dimension_semantics=("parallel", "arbitrary"),
            vmem_limit_bytes=vmem_limit),
        cost_estimate=pl.CostEstimate(
            flops=int(S_pad * B_pad * N_pad),
            transcendentals=0,
            bytes_accessed=int(2 * T * B_pad * N_pad * acc_isize
                               + S_pad * B_pad * N_pad * spk_isize)),
    )(bin_idx, bins, spikes_chunk)


# ----------------------------------------------------------------------------
# Stateful wrapper matching the PyTorch module's API.
# ----------------------------------------------------------------------------
@functools.partial(jax.jit, static_argnums=(1, 2))
def _flatten_features(bins, batch, nb_of_neurons):
    """(T, B_pad, N_pad) padded state -> torch-order (B, N*T) features."""
    T = bins.shape[0]
    x = bins[:, :batch, :nb_of_neurons]                 # (T, B, N)
    return jnp.transpose(x, (1, 2, 0)).reshape(batch, nb_of_neurons * T)


class TimeBinningLayerPallas:
    """JAX/Pallas port of TimeBinningLayer (stateful reservoir readout).

    bins are stored lane-dense as (nb_of_bins, batch_pad, neurons_pad);
    features() / forward's return value give torch's
    (batch, nb_neurons * nb_bins) row-major view.

    Hot loops should use forward_chunk() (one pallas_call per chunk) and read
    features() once at the end; the per-step forward() (which also flattens
    every call, per torch semantics) is kept for API parity.
    """

    def __init__(self, bin_size, max_duration, nb_of_neurons,
                 dtype=jnp.float32):
        self.bin_size = bin_size
        self.nb_of_bins = max_duration // bin_size + 1
        self.nb_of_neurons = nb_of_neurons
        self.dtype = dtype          # keep the accumulator f32 (exact counts)
        self.bins = None
        self._batch = None
        self._b_pad = None
        self._n_pad = None
        self._b_blk = None

    def number_of_features(self) -> int:
        return self.nb_of_bins * self.nb_of_neurons

    # -- state management ------------------------------------------------
    def _ensure_bins(self, batch):
        if self.bins is not None:
            return
        self._batch = batch
        self._b_pad = _round_up(batch, 8)
        self._n_pad = _round_up(self.nb_of_neurons, 128)
        # Batch block: split across the two v7x TensorCores when there is
        # enough batch, and keep the per-core bins slab under ~16 MiB of VMEM.
        b_blk = self._b_pad // 2 if self._b_pad % 16 == 0 else self._b_pad
        isz = jnp.dtype(self.dtype).itemsize
        while (self.nb_of_bins * b_blk * self._n_pad * isz > (16 << 20)
               and b_blk % 16 == 0):
            b_blk //= 2
        self._b_blk = b_blk
        self.bins = jnp.zeros(
            (self.nb_of_bins, self._b_pad, self._n_pad), dtype=self.dtype)

    def reset(self):
        self.bins = None

    def _pad_bn(self, x):
        """(..., B, N) -> (..., B_pad, N_pad), zero-padded."""
        pad = [(0, 0)] * (x.ndim - 2)
        pad += [(0, self._b_pad - x.shape[-2]),
                (0, self._n_pad - x.shape[-1])]
        if any(p != (0, 0) for p in pad):
            x = jnp.pad(x, pad)
        return x

    def _pick_s_blk(self, cap=32):
        bs = max(1, self.bin_size)
        if bs <= cap:
            return bs
        for s in range(cap, 0, -1):
            if bs % s == 0 and s >= 8:
                return s
        return cap

    def features(self):
        """Torch-order flattened readout (batch, nb_neurons * nb_bins)."""
        return _flatten_features(self.bins, self._batch, self.nb_of_neurons)

    # -- torch-compatible per-step path ------------------------------------
    def forward(self, spikes, time, **_):
        """One timestep: bins[..., time // bin_size] += spikes; returns the
        flattened bins (torch semantics).  NOTE: unlike torch indexing, an
        out-of-range `time` is clamped to the last bin instead of raising."""
        self._ensure_bins(spikes.shape[0])
        idx = jnp.clip(jnp.asarray([time // self.bin_size], dtype=jnp.int32),
                       0, self.nb_of_bins - 1)
        self.bins = time_bin_step(self.bins, self._pad_bn(spikes), idx)
        return self.features()

    # -- chunked fast path ----------------------------------------------------
    def forward_chunk(self, spikes_chunk, times, **_):
        """Accumulate S timesteps in one pallas_call.

        spikes_chunk: (S, B, N) in any dtype (cast to the f32 accumulator
        inside the kernel); times: (S,) integer times.  Returns features.
        """
        S, batch = spikes_chunk.shape[0], spikes_chunk.shape[1]
        self._ensure_bins(batch)
        idx = jnp.clip(jnp.asarray(times, dtype=jnp.int32) // self.bin_size,
                       0, self.nb_of_bins - 1).astype(jnp.int32)
        s_blk = self._pick_s_blk()                # = bin_size for typical sizes
        s_pad = _round_up(S, s_blk)
        spikes_chunk = self._pad_bn(spikes_chunk)
        if s_pad != S:
            # Padded steps add zero spikes into bin 0: a no-op on the state.
            spikes_chunk = jnp.pad(spikes_chunk,
                                   ((0, s_pad - S), (0, 0), (0, 0)))
            idx = jnp.pad(idx, (0, s_pad - S))
        self.bins = time_bin_chunk(self.bins, spikes_chunk, idx,
                                   s_blk=s_blk, b_blk=self._b_blk)
        return self.features()


if __name__ == "__main__":
    # Small deterministic example.
    batch = 2
    nb_of_neurons = 16
    bin_size = 4
    max_duration = 28          # -> nb_of_bins = 28 // 4 + 1 = 8
    n_steps = 8

    key = jax.random.PRNGKey(0)
    keys = jax.random.split(key, n_steps)
    spike_trains = jnp.stack([
        (jax.random.uniform(keys[t], (batch, nb_of_neurons)) < 0.3).astype(
            jnp.float32)
        for t in range(n_steps)
    ])  # (S, B, N)

    nb_of_bins = max_duration // bin_size + 1

    def reference(times):
        ref_bins = jnp.zeros((batch, nb_of_neurons, nb_of_bins), jnp.float32)
        for s in range(n_steps):
            ref_bins = ref_bins.at[:, :, int(times[s]) // bin_size].add(
                spike_trains[s])
        return ref_bins.reshape(batch, -1)

    times_seq = list(range(n_steps))            # bin-aligned -> kernel fast path
    times_irr = [0, 3, 4, 5, 9, 13, 14, 27]     # mixed bins  -> fallback path

    # Path 1: per-step forward (matches the PyTorch stateful API).
    layer = TimeBinningLayerPallas(bin_size, max_duration, nb_of_neurons)
    out_step = None
    for t in times_seq:
        out_step = layer.forward(spike_trains[t], time=t)
    out_step = jax.block_until_ready(out_step)

    # Path 2: chunked kernel, bin-aligned times (single-bin fast path).
    layer2 = TimeBinningLayerPallas(bin_size, max_duration, nb_of_neurons)
    out_chunk = jax.block_until_ready(
        layer2.forward_chunk(spike_trains, jnp.asarray(times_seq)))

    # Path 3: chunked kernel, non-aligned times (per-step scatter path).
    layer3 = TimeBinningLayerPallas(bin_size, max_duration, nb_of_neurons)
    out_chunk_irr = jax.block_until_ready(
        layer3.forward_chunk(spike_trains, jnp.asarray(times_irr)))

    ref_seq = reference(times_seq)
    ref_irr = reference(times_irr)

    assert out_step.shape == (batch, layer.number_of_features()), out_step.shape
    assert jnp.allclose(out_step, ref_seq, atol=1e-6), "per-step mismatch"
    assert jnp.allclose(out_chunk, ref_seq, atol=1e-6), "chunk (aligned) mismatch"
    assert jnp.allclose(out_chunk_irr, ref_irr, atol=1e-6), "chunk (ragged) mismatch"
    print("KERNEL_OK")
</pallas_src>

<mosaic_0001>
module attributes {stable_mosaic.version = 11 : i64} {
  func.func @_step_kernel(%arg0: i32, %arg1: memref<1xi32, #tpu.memory_space<smem>>, %arg2: memref<1x8x128xf32, #tpu.memory_space<vmem>>, %arg3: memref<8x128xf32, #tpu.memory_space<vmem>>, %arg4: memref<1x8x128xf32, #tpu.memory_space<vmem>>) attributes {dimension_semantics = [#tpu.dimension_semantics<arbitrary>], iteration_bounds = array<i64: 1>, scalar_prefetch = 1 : i64, scratch_operands = 0 : i64, tpu.core_type = #tpu.core_type<tc>, window_params = [{transform_indices = @transform_0, window_bounds = array<i64: 1, 8, 128>}, {pipeline_mode = #tpu.pipeline_mode<synchronous>, transform_indices = @transform_1, window_bounds = array<i64: 8, 128>}, {transform_indices = @transform_2, window_bounds = array<i64: 1, 8, 128>}]} {
    %c0 = arith.constant 0 : index
    %c0_0 = arith.constant 0 : index
    %c0_1 = arith.constant 0 : index
    %0 = vector.load %arg2[%c0, %c0_0, %c0_1] : memref<1x8x128xf32, #tpu.memory_space<vmem>>, vector<1x8x128xf32>
    %c0_2 = arith.constant 0 : index
    %c0_3 = arith.constant 0 : index
    %1 = vector.load %arg3[%c0_2, %c0_3] : memref<8x128xf32, #tpu.memory_space<vmem>>, vector<8x128xf32>
    %2 = vector.shape_cast %1 : vector<8x128xf32> to vector<1x8x128xf32>
    %3 = arith.addf %0, %2 : vector<1x8x128xf32>
    %c0_4 = arith.constant 0 : index
    %c0_5 = arith.constant 0 : index
    %c0_6 = arith.constant 0 : index
    %4 = vector.load %arg4[%c0_4, %c0_5, %c0_6] : memref<1x8x128xf32, #tpu.memory_space<vmem>>, vector<1x8x128xf32>
    tpu.vector_store %arg4[%c0_4, %c0_5, %c0_6], %3 {strides = array<i32>} : memref<1x8x128xf32, #tpu.memory_space<vmem>>, vector<1x8x128xf32>,
    return
  }
  func.func @transform_0(%arg0: i32, %arg1: memref<1xi32, #tpu.memory_space<smem>>) -> (i32, i32, i32) {
    %c0 = arith.constant 0 : index
    %0 = memref.load %arg1[%c0] : memref<1xi32, #tpu.memory_space<smem>>
    %c0_i32 = arith.constant 0 : i32
    %c0_i32_0 = arith.constant 0 : i32
    %c0_i32_1 = arith.constant 0 : i32
    return %0, %c0_i32, %c0_i32_0 : i32, i32, i32
  }
  func.func @transform_1(%arg0: i32, %arg1: memref<1xi32, #tpu.memory_space<smem>>) -> (i32, i32) {
    %c0_i32 = arith.constant 0 : i32
    %c0_i32_0 = arith.constant 0 : i32
    %c0_i32_1 = arith.constant 0 : i32
    return %c0_i32, %c0_i32_0 : i32, i32
  }
  func.func @transform_2(%arg0: i32, %arg1: memref<1xi32, #tpu.memory_space<smem>>) -> (i32, i32, i32) {
    %c0 = arith.constant 0 : index
    %0 = memref.load %arg1[%c0] : memref<1xi32, #tpu.memory_space<smem>>
    %c0_i32 = arith.constant 0 : i32
    %c0_i32_0 = arith.constant 0 : i32
    %c0_i32_1 = arith.constant 0 : i32
    return %0, %c0_i32, %c0_i32_0 : i32, i32, i32
  }
}

</mosaic_0001>

<bundles_post_ra>
// kernel: time_bin_step.1
= control target key start
LH: loop header
LB: loop body
LE: loop exit
PB: predicated region body
PF: predicated region fallthrough
CT: control target
= control target key end

     0   :  { %9 = vsyncpa [#allocation5], 0  ;;  %s215_s0 = inlined_call_operand.<no memory space> [shape: s32[1], index: 0, kind: input, shape index: {}]   ;;  %s216_s1 = inlined_call_operand.hbm [shape: f32[8,8,128], index: 1, kind: input, shape index: {}, may-alias: {1,3}]   ;;  %s217_s2 = inlined_call_operand.hbm [shape: f32[8,128], index: 2, kind: input, shape index: {}]   ;;  %s218_s3 = inlined_call_operand.hbm [shape: f32[8,8,128], index: 3, kind: output, shape index: {}, may-alias: {1,3}]  }
   0x1   :  { %10 = vsyncpa [#allocation8], 0 }
   0x2   :  { %11 = vsyncpa [#allocation6], 0  ;;  %s70_s14 = sshll.u32 %s215_s0, 7  ;;  %s151_s20 = smov [#allocation4]  }
   0x3   :  { %s19_s19 = scalar_lea.hbm %s216_s1, %s70_s14  ;;  %s21_s21 = sshll.u32 %s151_s20, 4  ;;  %s22_s21 = int_to_ptr.vmem [resolvable:$true] %s21_s21 }
   0x4   :  { %s75_s22 = scalar_lea.hbm %s19_s19, 128  ;;  %s77_s25 = scalar_lea.hbm %s216_s1, 1024 }
   0x5   :  { %p76_p0 = scmp.ne.s32.totalorder %s19_s19, %s75_s22  ;;  %p78_p1 = scmp.lt.u32.totalorder %s19_s19, %s216_s1 }
   0x6   :  { %p79_p2 = scmp.lt.u32.totalorder %s77_s25, %s75_s22  ;;  %p81_p4 = scmp.lt.u32.totalorder %s75_s22, %s19_s19 }
   0x8   :  { %p80_p3 = por %p79_p2, %p78_p1 }
   0xa   :  { %p82_p5 = por %p81_p4, %p80_p3 }
   0xc   :  { %p83_p6 = pnand %p82_p5, %p76_p0 }
   0xe   :  { %86 = shalt.err (!%p83_p6)
}
   0xf   :  { %s87_s28 = scalar_lea.vmem %s22_s21, 128  ;;  %p92_p8 = scmp.lt.s32.totalorder %s22_s21, %s22_s21 }
  0x10   :  { %p88_p7 = scmp.ne.s32.totalorder %s22_s21, %s87_s28  ;;  %p93_p9 = scmp.lt.s32.totalorder %s87_s28, %s87_s28 }
  0x12   :  { %p94_p10 = por %p93_p9, %p92_p8 }
  0x14   :  { %p95_p11 = pnand %p94_p10, %p88_p7 }
  0x16   :  { %98 = shalt.err (!%p95_p11)
}
  0x17   :  { %24 = dma.hbm_to_vmem [thread:$0]  %s19_s19, 128, %s22_s21, [#allocation5]  }
  0x18   :  { %s152_s29 = smov [#allocation7]   ;;  %s99_s1 = scalar_lea.hbm %s217_s2, 128 }
  0x19   :  { %s31_s30 = sshll.u32 %s152_s29, 4  ;;  %p100_p12 = scmp.ne.s32.totalorder %s217_s2, %s99_s1  ;;  %s32_s30 = int_to_ptr.vmem [resolvable:$true] %s31_s30 }
  0x1a   :  { %p103_p13 = scmp.lt.u32.totalorder %s99_s1, %s217_s2 }
  0x1c   :  { %p105_p0 = pnand %p103_p13, %p100_p12 }
  0x1e   :  { %108 = shalt.err (!%p105_p0)
}
  0x1f   :  { %s109_s10 = scalar_lea.vmem %s32_s30, 128  ;;  %p114_p2 = scmp.lt.s32.totalorder %s32_s30, %s32_s30 }
  0x20   :  { %p110_p1 = scmp.ne.s32.totalorder %s32_s30, %s109_s10  ;;  %p115_p3 = scmp.lt.s32.totalorder %s109_s10, %s109_s10 }
  0x22   :  { %p116_p4 = por %p115_p3, %p114_p2 }
  0x24   :  { %p117_p5 = pnand %p116_p4, %p110_p1 }
  0x26   :  { %120 = shalt.err (!%p117_p5)
}
  0x27   :  { %34 = dma.hbm_to_vmem [thread:$0]  %s217_s2, 128, %s32_s30, [#allocation8]  }
  0x28   :  { %145 = dma.done.wait [#allocation5], 128  }
  0x29   :  { %146 = vsyncadd [#allocation5], 4294967168 }
  0x2a   :  { %147 = dma.done.wait [#allocation8], 128  }
  0x2b   :  { %148 = vsyncadd [#allocation8], 4294967168  ;;  %s153_s13 = smov [#allocation9]   ;;  %v43_v0 = vld [vmem:[#allocation4] sm:$0xff]  ;;  %v44_v1 = vld [vmem:[#allocation7] sm:$0xff]  ;;  %s54_s20 = scalar_lea.hbm %s218_s3, %s70_s14 }
  0x2c   :  { %s56_s15 = sshll.u32 %s153_s13, 4  ;;  %v45_v2 = vadd.f32 %v44_v1, %v43_v0  ;;  %s57_s15 = int_to_ptr.vmem [resolvable:$true] %s56_s15 }
  0x2d   :  { %s121_s2 = scalar_lea.vmem %s57_s15, 128  ;;  %p126_p7 = scmp.lt.s32.totalorder %s57_s15, %s57_s15 }
  0x2e   :  { %46 = vst [vmem:[#allocation9] sm:$0xff] %v45_v2  ;;  %p122_p6 = scmp.ne.s32.totalorder %s57_s15, %s121_s2  ;;  %p127_p8 = scmp.lt.s32.totalorder %s121_s2, %s121_s2 }
  0x30   :  { %p128_p9 = por %p127_p8, %p126_p7 }
  0x32   :  { %p129_p10 = pnand %p128_p9, %p122_p6 }
  0x34   :  { %132 = shalt.err (!%p129_p10)
}
  0x35   :  { %s133_s21 = scalar_lea.hbm %s54_s20, 128  ;;  %s135_s24 = scalar_lea.hbm %s218_s3, 1024 }
  0x36   :  { %p134_p11 = scmp.ne.s32.totalorder %s54_s20, %s133_s21  ;;  %p136_p12 = scmp.lt.u32.totalorder %s54_s20, %s218_s3 }
  0x37   :  { %p137_p13 = scmp.lt.u32.totalorder %s135_s24, %s133_s21  ;;  %p139_p1 = scmp.lt.u32.totalorder %s133_s21, %s54_s20 }
  0x39   :  { %p138_p0 = por %p137_p13, %p136_p12 }
  0x3b   :  { %p140_p2 = por %p139_p1, %p138_p0 }
  0x3d   :  { %p141_p3 = pnand %p140_p2, %p134_p11 }
  0x3f   :  { %144 = shalt.err (!%p141_p3)
}
  0x40   :  { %59 = dma.vmem_to_hbm [thread:$0]  %s57_s15, 128, %s54_s20, [#allocation6]  }
  0x41   :  { %149 = dma.done.wait [#allocation6], 128  }
  0x42   :  { %150 = vsyncadd [#allocation6], 4294967168 }
  0x43   :  { %63 = vsyncpa [#allocation5], 1 }
  0x44   :  { %64 = vsyncpa [#allocation8], 1 }
  0x45   :  { %65 = vsyncpa [#allocation6], 1 }

</bundles_post_ra>
